<compile_context>
chip_gen: v7x
topology: tpu7x:2x2x1
jax: 0.10.0
libtpu: 0.0.40
codegen_flags: <defaults>
</compile_context>

<pallas_src>
import functools

import jax
import jax.numpy as jnp
from jax.experimental import pallas as pl
from jax.experimental.pallas import tpu as pltpu


_LANES = 128
_TARGET_BLOCK_BYTES = 4 * 1024 * 1024   # ~4 MiB per block (per buffer)
_MIN_SPLIT_BYTES = 1 * 1024 * 1024      # split into >=2 blocks above this
_VMEM_LIMIT_BYTES = 32 * 1024 * 1024    # 4 live buffers (~24 MiB max) + headroom


def _cdiv(a, b):
    return -(-a // b)


def _reduce_bits_kernel(x_ref, o_ref, *, scale, denom):
    # 1 mul + 1 floor + 1 div per element in f32 -- trivially compute-light
    # (VPU has huge slack); the kernel is purely DMA/HBM bound.
    xv = x_ref[...].astype(jnp.float32)
    o_ref[...] = (jnp.floor(xv * scale) / denom).astype(o_ref.dtype)


def _sublanes_for(dtype):
    # Packed dtypes pack along sublanes: native row granularity is 8 (f32),
    # 16 (bf16/f16), 32 (int8/fp8).
    itemsize = jnp.dtype(dtype).itemsize
    return max(8, 32 // itemsize)


def _pick_block_rows(rows, lanes, itemsize, sublanes):
    """Choose block_rows (multiple of `sublanes`, or the full dim)."""
    total_bytes = rows * lanes * itemsize
    if total_bytes <= _MIN_SPLIT_BYTES:
        return rows                      # single block; full dim is always legal

    group_bytes = sublanes * lanes * itemsize
    groups = _cdiv(rows, sublanes)       # sublane-group granularity
    g_target = max(1, _TARGET_BLOCK_BYTES // group_bytes)
    g = min(g_target, _cdiv(groups, 2))  # at least 2 blocks once we split
    nblocks = _cdiv(groups, g)

    if nblocks > 1 and nblocks % 2 == 1:
        # Prefer an even block count so v7x's two TensorCores get equal work.
        # Try one more block (smaller tiles) first, then one fewer (<=1.5x
        # bigger tiles, still well inside the 32 MiB scoped-VMEM budget).
        for cand_nb in (nblocks + 1, nblocks - 1):
            if cand_nb < 2:
                continue
            cand_g = _cdiv(groups, cand_nb)
            if _cdiv(groups, cand_g) % 2 == 0:
                g = cand_g
                break

    return g * sublanes


def _reduce_bits_2d(x2d, scale, denom, donate_input):
    """Run the elementwise kernel over a lane-dense (rows, 128) slab."""
    rows, lanes = x2d.shape
    itemsize = jnp.dtype(x2d.dtype).itemsize
    sublanes = _sublanes_for(x2d.dtype)
    block_rows = _pick_block_rows(rows, lanes, itemsize, sublanes)
    grid = (pl.cdiv(rows, block_rows),)  # partial last block is masked by Pallas

    kernel = functools.partial(_reduce_bits_kernel, scale=scale, denom=denom)

    return pl.pallas_call(
        kernel,
        out_shape=jax.ShapeDtypeStruct((rows, lanes), x2d.dtype),
        grid_spec=pltpu.PrefetchScalarGridSpec(
            num_scalar_prefetch=0,
            grid=grid,
            in_specs=[pl.BlockSpec((block_rows, lanes), lambda i: (i, 0))],
            out_specs=pl.BlockSpec((block_rows, lanes), lambda i: (i, 0)),
        ),
        compiler_params=pltpu.CompilerParams(
            dimension_semantics=("parallel",),
            vmem_limit_bytes=_VMEM_LIMIT_BYTES,
        ),
        # Only saves an output allocation when the caller actually donates x
        # (jit(..., donate_argnums=...)); otherwise XLA inserts a copy.
        input_output_aliases=({0: 0} if donate_input else {}),
    )(x2d)


def reduce_bits(x, n_bits, *, donate_input=False):
    """Pallas implementation of ReduceBits.forward (elementwise)."""
    if n_bits == 8:
        return x

    scale = 255.0 / float(2 ** (8 - n_bits))
    denom = float(2 ** n_bits - 1)

    orig_shape = x.shape
    n = x.size
    if n == 0:
        return x

    n_main = (n // _LANES) * _LANES

    if n_main == n:
        # Fast path: metadata-only reshape into a lane-dense (rows, 128) slab.
        # No pad, no output slice -- HBM traffic is exactly one read + write.
        rows = n // _LANES
        y2d = _reduce_bits_2d(x.reshape(rows, _LANES), scale, denom, donate_input)
        return y2d.reshape(orig_shape)

    # Ragged flat size (rare for NCHW image tensors): aligned prefix through
    # the kernel, the < 128-element tail in plain jnp, single concatenate.
    # TODO(synk): the prefix slice + concatenate still copy the prefix once;
    # could be eliminated with a donated output buffer + two aliased calls.
    x_flat = x.reshape(-1)
    if n_main == 0:
        y = jnp.floor(x_flat.astype(jnp.float32) * scale) / denom
        return y.astype(x.dtype).reshape(orig_shape)

    head = _reduce_bits_2d(
        x_flat[:n_main].reshape(n_main // _LANES, _LANES), scale, denom, False
    ).reshape(-1)
    tail = (jnp.floor(x_flat[n_main:].astype(jnp.float32) * scale) / denom).astype(x.dtype)
    return jnp.concatenate([head, tail]).reshape(orig_shape)


if __name__ == "__main__":
    n_bits = 5  # any value != 8 exercises the compute path

    def ref_fn(xx):
        xf = xx.astype(jnp.float32)
        return (jnp.floor(xf * 255.0 / 2 ** (8 - n_bits)) / (2 ** n_bits - 1)).astype(xx.dtype)

    # Small NCHW tensor (aligned, single-block path).
    x = jax.random.uniform(jax.random.PRNGKey(0), (2, 4, 16, 16), dtype=jnp.float32)
    y = jax.block_until_ready(reduce_bits(x, n_bits))
    assert jnp.allclose(y, ref_fn(x), atol=1e-6), "mismatch vs reference"

    # Identity path (n_bits == 8).
    y8 = jax.block_until_ready(reduce_bits(x, 8))
    assert jnp.array_equal(y8, x)

    # CelebA-HQ-like batch: exercises the multi-block, even-block-count path.
    x_big = jax.random.uniform(jax.random.PRNGKey(1), (2, 3, 256, 256), dtype=jnp.float32)
    y_big = jax.block_until_ready(reduce_bits(x_big, n_bits))
    assert jnp.allclose(y_big, ref_fn(x_big), atol=1e-6), "mismatch vs reference (big)"

    # Ragged flat size: pad-free prefix + plain-jnp tail (< 128 elements).
    x_r = jax.random.uniform(jax.random.PRNGKey(2), (3, 7, 11), dtype=jnp.float32)
    y_r = jax.block_until_ready(reduce_bits(x_r, n_bits))
    assert jnp.allclose(y_r, ref_fn(x_r), atol=1e-6), "mismatch vs reference (ragged)"

    # bf16 storage: exercises the 16-sublane native tile granularity.
    x_bf = jax.random.uniform(jax.random.PRNGKey(3), (2, 4, 16, 16)).astype(jnp.bfloat16)
    y_bf = jax.block_until_ready(reduce_bits(x_bf, n_bits))
    assert jnp.allclose(y_bf.astype(jnp.float32), ref_fn(x_bf).astype(jnp.float32),
                        atol=1e-2), "mismatch vs reference (bf16)"

    # Aliased-output path (pair with jit(donate_argnums=...) in real use).
    y_a = jax.block_until_ready(reduce_bits(x, n_bits, donate_input=True))
    assert jnp.allclose(y_a, ref_fn(x), atol=1e-6), "mismatch vs reference (aliased)"

    print("KERNEL_OK")
</pallas_src>

<mosaic_0001>
module attributes {stable_mosaic.version = 11 : i64} {
  func.func @_reduce_bits_kernel(%arg0: i32, %arg1: memref<16x128xf32, #tpu.memory_space<vmem>>, %arg2: memref<16x128xf32, #tpu.memory_space<vmem>>) attributes {dimension_semantics = [#tpu.dimension_semantics<parallel>], iteration_bounds = array<i64: 1>, scalar_prefetch = 0 : i64, scratch_operands = 0 : i64, tpu.core_type = #tpu.core_type<tc>, window_params = [{transform_indices = @transform_0, window_bounds = array<i64: 16, 128>}, {transform_indices = @transform_1, window_bounds = array<i64: 16, 128>}]} {
    %c0 = arith.constant 0 : index
    %c0_0 = arith.constant 0 : index
    %0 = vector.load %arg1[%c0, %c0_0] : memref<16x128xf32, #tpu.memory_space<vmem>>, vector<16x128xf32>
    %cst = arith.constant 3.187500e+01 : f32
    %1 = vector.broadcast %cst : f32 to vector<16x128xf32>
    %2 = arith.mulf %0, %1 : vector<16x128xf32>
    %3 = math.floor %2 : vector<16x128xf32>
    %cst_1 = arith.constant 3.100000e+01 : f32
    %4 = vector.broadcast %cst_1 : f32 to vector<16x128xf32>
    %5 = arith.divf %3, %4 : vector<16x128xf32>
    %c0_2 = arith.constant 0 : index
    %c0_3 = arith.constant 0 : index
    %6 = vector.load %arg2[%c0_2, %c0_3] : memref<16x128xf32, #tpu.memory_space<vmem>>, vector<16x128xf32>
    tpu.vector_store %arg2[%c0_2, %c0_3], %5 {strides = array<i32>} : memref<16x128xf32, #tpu.memory_space<vmem>>, vector<16x128xf32>,
    return
  }
  func.func @transform_0(%arg0: i32) -> (i32, i32) {
    %c0_i32 = arith.constant 0 : i32
    %c0_i32_0 = arith.constant 0 : i32
    return %arg0, %c0_i32 : i32, i32
  }
  func.func @transform_1(%arg0: i32) -> (i32, i32) {
    %c0_i32 = arith.constant 0 : i32
    %c0_i32_0 = arith.constant 0 : i32
    return %arg0, %c0_i32 : i32, i32
  }
}

</mosaic_0001>

<bundles_post_ra>
// kernel: tpu_custom_call.1
= control target key start
LH: loop header
LB: loop body
LE: loop exit
PB: predicated region body
PF: predicated region fallthrough
CT: control target
= control target key end

     0   :  { %6 = vsyncpa [#allocation3], 0  ;;  %s147_s0 = inlined_call_operand.hbm [shape: f32[16,128], index: 0, kind: input, shape index: {}]   ;;  %s148_s1 = inlined_call_operand.hbm [shape: f32[16,128], index: 1, kind: output, shape index: {}]  }
   0x1   :  { %7 = vsyncpa [#allocation4], 0  ;;  %s103_s6 = smov [#allocation2]   ;;  %s55_s10 = scalar_lea.hbm %s147_s0, 256 }
   0x2   :  { %s13_s7 = sshll.u32 %s103_s6, 4  ;;  %p56_p0 = scmp.ne.s32.totalorder %s147_s0, %s55_s10  ;;  %s14_s7 = int_to_ptr.vmem [resolvable:$true] %s13_s7 }
   0x3   :  { %p59_p1 = scmp.lt.u32.totalorder %s55_s10, %s147_s0 }
   0x5   :  { %p61_p2 = pnand %p59_p1, %p56_p0 }
   0x7   :  { %64 = shalt.err (!%p61_p2)
}
   0x8   :  { %s65_s15 = scalar_lea.vmem %s14_s7, 256  ;;  %p70_p4 = scmp.lt.s32.totalorder %s14_s7, %s14_s7 }
   0x9   :  { %p66_p3 = scmp.ne.s32.totalorder %s14_s7, %s65_s15  ;;  %p71_p5 = scmp.lt.s32.totalorder %s65_s15, %s65_s15 }
   0xb   :  { %p72_p6 = por %p71_p5, %p70_p4 }
   0xd   :  { %p73_p7 = pnand %p72_p6, %p66_p3 }
   0xf   :  { %76 = shalt.err (!%p73_p7)
}
  0x10   :  { %s104_s16 = smov 128   ;;  %s105_s17 = smov 8  }
  0x11   :  { %19 = dma.hbm_to_vmem [thread:$0]  %s147_s0, 256, %s14_s7, [#allocation3], %s104_s16, %s104_s16, %s105_s17  }
  0x12   :  { %99 = dma.done.wait [#allocation3], 256  }
  0x13   :  { %100 = vsyncadd [#allocation3], 4294967040  ;;  %v23_v0 = vld [vmem:[#allocation2] sm:$0xff]  ;;  %v24_v1 = vld [vmem:[#allocation2 + $0x8] sm:$0xff]  ;;  %s106_s20 = smov [#allocation5]  }
  0x14   :  { %v25_v2 = vmul.f32 31.875, %v23_v0  ;;  %v26_v3 = vmul.f32 31.875, %v24_v1  ;;  %s39_s21 = sshll.u32 %s106_s20, 4  ;;  %s40_s21 = int_to_ptr.vmem [resolvable:$true] %s39_s21 }
  0x15   :  { %s77_s22 = scalar_lea.vmem %s40_s21, 256  ;;  %p82_p9 = scmp.lt.s32.totalorder %s40_s21, %s40_s21 }
  0x16   :  { %v27_v4 = vfloor.f32 %v25_v2  ;;  %v28_v5 = vfloor.f32 %v26_v3  ;;  %p78_p8 = scmp.ne.s32.totalorder %s40_s21, %s77_s22  ;;  %p83_p10 = scmp.lt.s32.totalorder %s77_s22, %s77_s22 }
  0x18   :  { %v30_v6 = vmul.f32 0.032258064, %v27_v4  ;;  %v31_v7 = vmul.f32 0.032258064, %v28_v5  ;;  %p84_p11 = por %p83_p10, %p82_p9 }
  0x1a   :  { %32 = vst [vmem:[#allocation5] sm:$0xff] %v30_v6  ;;  %33 = vst [vmem:[#allocation5 + $0x8] sm:$0xff] %v31_v7  ;;  %p85_p12 = pnand %p84_p11, %p78_p8 }
  0x1c   :  { %88 = shalt.err (!%p85_p12)
}
  0x1d   :  { %s89_s24 = scalar_lea.hbm %s148_s1, 256 }
  0x1e   :  { %p90_p13 = scmp.ne.s32.totalorder %s148_s1, %s89_s24  ;;  %p93_p0 = scmp.lt.u32.totalorder %s89_s24, %s148_s1 }
  0x20   :  { %p95_p1 = pnand %p93_p0, %p90_p13 }
  0x22   :  { %98 = shalt.err (!%p95_p1)
}
  0x23   :  { %45 = dma.vmem_to_hbm [thread:$0]  %s40_s21, 256, %s148_s1, [#allocation4], %s104_s16, %s104_s16, %s105_s17  }
  0x24   :  { %101 = dma.done.wait [#allocation4], 256  }
  0x25   :  { %102 = vsyncadd [#allocation4], 4294967040 }
  0x26   :  { %49 = vsyncpa [#allocation3], 1 }
  0x27   :  { %50 = vsyncpa [#allocation4], 1 }

</bundles_post_ra>
